<compile_context>
chip_gen: v6e
topology: v6e:2x2x1
jax: 0.10.0
libtpu: 0.0.40
codegen_flags: <defaults>
</compile_context>

<pallas_src>
import math
import numpy as np
import jax
import jax.numpy as jnp
from jax.experimental import pallas as pl
from jax.experimental.pallas import tpu as pltpu


# ----------------------------------------------------------------------------
# Fused Pallas kernel: input projection + unrolled recurrence + output head
# ----------------------------------------------------------------------------
def gclstm_fused_kernel(cases_ref, GWx_ref, Wh_ref, b_ref, nw_ref,
                        base_ref, wfc_h_ref, out_ref):
    """Whole GC-LSTM forward in one kernel invocation.

    cases_ref   : (T, B, F)   input sequence, T-major (wrapper transposes)
    GWx_ref     : (F, 4F)     graph-conv folded into gate weights (G @ Wx)
    Wh_ref      : (F, 4F)     gate weights acting on the hidden state
    b_ref       : (1, 4F)     gate biases (order: f, i, o, C)
    nw_ref      : (1, F)      A_list[-1] @ Neighbor_weight
    base_ref    : (P, B, F)   head attribute projection + fc bias (hoisted)
    wfc_h_ref   : (1, P)      SMEM scalar(s): fc weight column for the hidden state
    out_ref     : (P, B, F)   final output (wrapper transposes to (B, P, F))
    """
    T, B, Fd = cases_ref.shape
    P = out_ref.shape[0]

    # (1) Hoisted input projection: one (T*B, F) @ (F, 4F) MXU matmul for all
    #     timesteps; bias folded in here (off the serial path).
    #     The (T, B, F) -> (T*B, F) merge is a free relayout as long as B is a
    #     multiple of the sublane count (8); B=8 here.
    x_all = cases_ref[...].reshape(T * B, Fd)
    zx = jnp.dot(x_all, GWx_ref[...], preferred_element_type=jnp.float32)
    zx = (zx + b_ref[...]).reshape(T, B, 4 * Fd)               # (T, B, 4F)

    Wh = Wh_ref[...]                                           # (F, 4F)
    nw = nw_ref[...]                                           # (1, F)

    # (2) Serial recurrence, fully unrolled (T is a static shape), h/c live in
    #     vregs; only h @ Wh + the gate nonlinearities are on the serial path.
    #     zx[t] is a zero-cost leading-dim index (no per-step sublane gather).
    h = jnp.zeros((B, Fd), jnp.float32)
    c = jnp.zeros((B, Fd), jnp.float32)
    for t in range(T):
        z = zx[t] + jnp.dot(h, Wh, preferred_element_type=jnp.float32)
        f = jax.nn.sigmoid(z[:, 0 * Fd:1 * Fd])
        i = jax.nn.sigmoid(z[:, 1 * Fd:2 * Fd])
        o = jax.nn.sigmoid(z[:, 2 * Fd:3 * Fd])
        Cg = jnp.tanh(z[:, 3 * Fd:4 * Fd])
        c = f * (c * nw) + i * Cg                # Cell * mv(A_list[-1], Neigh_w)
        h = o * jnp.tanh(c)

    # (3) Fused output head: out[p] = att_proj[p] + h * w_fc[E, p]
    #     (pred_size P is small and static; scalar * vreg is a single VPU op)
    for p in range(P):
        out_ref[p] = base_ref[p] + h * wfc_h_ref[0, p]


# ----------------------------------------------------------------------------
# Wrapper
# ----------------------------------------------------------------------------
def gclstm_forward(atts, cases, params):
    # TODO(synk): upstream `Embeddings` class is not provided; approximated as
    # a per-node MLP with the given layer sizes (plain-JAX glue).
    a = atts
    emb = params["emb"]
    for idx, (w, bb) in enumerate(emb):
        a = a @ w + bb
        if idx < len(emb) - 1:
            a = jax.nn.relu(a)                                 # (B, F, 10)

    B, T, F = cases.shape
    w_fc, b_fc = params["w_fc"], params["b_fc"]                # (E+1, P), (1, P)
    E = w_fc.shape[0] - 1
    P = w_fc.shape[1]

    # Head pieces that do NOT depend on the recurrence are hoisted out of the
    # serial kernel; only the hidden-state column (a scalar per p) is fused.
    # base[p, b, f] = sum_e a[b, f, e] * w_fc[e, p] + b_fc[p]
    base = jnp.einsum('bfe,ep->pbf', a, w_fc[:E, :]) + b_fc[0].reshape(P, 1, 1)
    wfc_h = w_fc[E:E + 1, :]                                   # (1, P) -> SMEM scalars

    # Fold the graph convolution into the gate weights once:
    #   z = gc @ Wx = (x @ G) @ Wx = x @ (G @ Wx)   (float reassociation only)
    GWx = params["G"] @ params["Wx"]                           # (F, 4F)

    # T-major layout so each step's gate preactivation is a leading-dim index.
    cases_t = jnp.transpose(cases, (1, 0, 2))                  # (T, B, F)

    itemsize = 4
    bytes_accessed = itemsize * (T * B * F + 2 * F * 4 * F + 4 * F + F
                                 + P * B * F + P + P * B * F)
    cost = pl.CostEstimate(
        flops=4 * T * B * F * 4 * F + 10 * T * B * F + 2 * P * B * F,
        transcendentals=5 * T * B * F,
        bytes_accessed=bytes_accessed,
    )

    vmem = pl.BlockSpec(memory_space=pltpu.MemorySpace.VMEM)
    smem = pl.BlockSpec(memory_space=pltpu.MemorySpace.SMEM)
    out_pbf = pl.pallas_call(
        gclstm_fused_kernel,
        out_shape=jax.ShapeDtypeStruct((P, B, F), jnp.float32),
        in_specs=[vmem] * 6 + [smem],
        out_specs=vmem,
        cost_estimate=cost,
    )(cases_t, GWx, params["Wh"], params["b"], params["nw"], base, wfc_h)

    return jnp.transpose(out_pbf, (1, 0, 2))                   # (B, P, F)


# ----------------------------------------------------------------------------
# Deterministic parameter construction (mirrors the PyTorch __init__ shapes)
# ----------------------------------------------------------------------------
def make_params(key, att_size, fea_size, K, pred_size):
    F = fea_size
    keys = jax.random.split(key, 32)
    ki = iter(range(32))

    def unif(k, shape, bound):
        return jax.random.uniform(k, shape, jnp.float32, -bound, bound)

    # adjacency + normalisation + K-hop list (exactly as in the module)
    A = jax.random.uniform(keys[next(ki)], (F, F), jnp.float32, 0.1, 1.0)
    norm_A = jnp.diag(1.0 / jnp.sum(A, axis=0)) @ A
    A_list = []
    A_temp = jnp.eye(F, dtype=jnp.float32)
    for _ in range(K):
        A_temp = A_temp @ norm_A
        A_temp = jnp.minimum(A_temp, 1.0)            # Clamp_A=True (max=1.0)
        A_list.append(A_temp)

    # FilterLinear weights: gc_k(x) = x @ (A_k * W_k)^T  -> stack into G
    stdv = 1.0 / math.sqrt(F)
    G_cols = []
    for k in range(K):
        Wk = unif(keys[next(ki)], (F, F), stdv)      # (out, in)
        G_cols.append((A_list[k] * Wk).T)            # (F, F)
    G = jnp.concatenate(G_cols, axis=1)              # (F, K*F)

    # gate linears fl, il, ol, Cl : Linear(K*F + F, F)
    in_dim = K * F + F
    stdg = 1.0 / math.sqrt(in_dim)
    Wx_parts, Wh_parts, b_parts = [], [], []
    for _gate in range(4):                           # order: f, i, o, C
        Wg = unif(keys[next(ki)], (F, in_dim), stdg)     # (out, in)
        bg = unif(keys[next(ki)], (F,), stdg)
        WgT = Wg.T                                   # (in, out)
        Wx_parts.append(WgT[:K * F, :])
        Wh_parts.append(WgT[K * F:, :])
        b_parts.append(bg)
    Wx = jnp.concatenate(Wx_parts, axis=1)           # (K*F, 4F)
    Wh = jnp.concatenate(Wh_parts, axis=1)           # (F,  4F)
    b = jnp.concatenate(b_parts, axis=0)[None, :]    # (1,  4F)

    # Neighbor_weight and nw = A_list[-1] @ Neighbor_weight
    neighbor_w = unif(keys[next(ki)], (F,), stdv)
    nw = (A_list[-1] @ neighbor_w)[None, :]          # (1, F)

    # embedding MLP [att_size, 100, 100, 50, 20, 10]
    emb_dims = [att_size, 100, 100, 50, 20, 10]
    emb = []
    for din, dout in zip(emb_dims[:-1], emb_dims[1:]):
        s = 1.0 / math.sqrt(din)
        emb.append((unif(keys[next(ki)], (din, dout), s),
                    unif(keys[next(ki)], (dout,), s)))

    # fc: Linear(11, pred_size)
    s = 1.0 / math.sqrt(11)
    w_fc = unif(keys[next(ki)], (11, pred_size), s)  # (in, out)
    b_fc = unif(keys[next(ki)], (1, pred_size), s)

    return dict(G=G, Wx=Wx, Wh=Wh, b=b, nw=nw, emb=emb, w_fc=w_fc, b_fc=b_fc)


# ----------------------------------------------------------------------------
# Pure-JAX reference (for verification)
# ----------------------------------------------------------------------------
def reference_forward(atts, cases, params):
    a = atts
    emb = params["emb"]
    for idx, (w, bb) in enumerate(emb):
        a = a @ w + bb
        if idx < len(emb) - 1:
            a = jax.nn.relu(a)
    B, T, F = cases.shape
    h = jnp.zeros((B, F), jnp.float32)
    c = jnp.zeros((B, F), jnp.float32)
    for t in range(T):
        x = cases[:, t, :]
        gc = x @ params["G"]
        z = gc @ params["Wx"] + h @ params["Wh"] + params["b"]
        f = jax.nn.sigmoid(z[:, :F])
        i = jax.nn.sigmoid(z[:, F:2 * F])
        o = jax.nn.sigmoid(z[:, 2 * F:3 * F])
        Cg = jnp.tanh(z[:, 3 * F:])
        c = f * (c * params["nw"]) + i * Cg
        h = o * jnp.tanh(c)
    x11 = jnp.concatenate([a, h[:, :, None]], axis=2)     # (B, F, 11)
    out = x11 @ params["w_fc"] + params["b_fc"]            # (B, F, P)
    return jnp.transpose(out, (0, 2, 1))


# ----------------------------------------------------------------------------
if __name__ == "__main__":
    B, T, F = 8, 8, 16            # batch, time steps, fea_size (= graph nodes)
    K = 3                         # K-hop graph
    ATT = 6                       # att_size
    PRED = 1                      # pred_size

    key = jax.random.PRNGKey(0)
    k_params, k_atts, k_cases = jax.random.split(key, 3)

    params = make_params(k_params, ATT, F, K, PRED)
    atts = jax.random.normal(k_atts, (B, F, ATT), jnp.float32)
    cases = jax.random.normal(k_cases, (B, T, F), jnp.float32)

    fwd = jax.jit(gclstm_forward)
    out = jax.block_until_ready(fwd(atts, cases, params))

    ref = jax.block_until_ready(reference_forward(atts, cases, params))
    np.testing.assert_allclose(np.asarray(out), np.asarray(ref),
                               rtol=1e-3, atol=1e-4)
    assert out.shape == (B, PRED, F)

    print("KERNEL_OK")
</pallas_src>

<mosaic_0001>
module attributes {stable_mosaic.version = 11 : i64} {
  func.func @gclstm_fused_kernel(%arg0: memref<8x8x16xf32, #tpu.memory_space<vmem>>, %arg1: memref<16x64xf32, #tpu.memory_space<vmem>>, %arg2: memref<16x64xf32, #tpu.memory_space<vmem>>, %arg3: memref<1x64xf32, #tpu.memory_space<vmem>>, %arg4: memref<1x16xf32, #tpu.memory_space<vmem>>, %arg5: memref<1x8x16xf32, #tpu.memory_space<vmem>>, %arg6: memref<1x1xf32, #tpu.memory_space<smem>>, %arg7: memref<1x8x16xf32, #tpu.memory_space<vmem>>) attributes {dimension_semantics = [], scalar_prefetch = 0 : i64, scratch_operands = 0 : i64, tpu.core_type = #tpu.core_type<tc>} {
    %c0 = arith.constant 0 : index
    %c0_0 = arith.constant 0 : index
    %c0_1 = arith.constant 0 : index
    %0 = vector.load %arg0[%c0, %c0_0, %c0_1] : memref<8x8x16xf32, #tpu.memory_space<vmem>>, vector<8x8x16xf32>
    %1 = vector.shape_cast %0 : vector<8x8x16xf32> to vector<64x16xf32>
    %c0_2 = arith.constant 0 : index
    %c0_3 = arith.constant 0 : index
    %2 = vector.load %arg1[%c0_2, %c0_3] : memref<16x64xf32, #tpu.memory_space<vmem>>, vector<16x64xf32>
    %cst = arith.constant dense<0.000000e+00> : vector<64x64xf32>
    %3 = tpu.matmul %1, %2, %cst {dimension_numbers = #tpu.dot_dimension_numbers<[1], [0], [0], [1], [0, 0, 1, 1], [], []>} : vector<64x16xf32>, vector<16x64xf32>, vector<64x64xf32> -> vector<64x64xf32>
    %c0_4 = arith.constant 0 : index
    %c0_5 = arith.constant 0 : index
    %4 = vector.load %arg3[%c0_4, %c0_5] : memref<1x64xf32, #tpu.memory_space<vmem>>, vector<1x64xf32>
    %5 = vector.broadcast %4 : vector<1x64xf32> to vector<64x64xf32>
    %6 = arith.addf %3, %5 : vector<64x64xf32>
    %7 = vector.shape_cast %6 : vector<64x64xf32> to vector<8x8x64xf32>
    %c0_6 = arith.constant 0 : index
    %c0_7 = arith.constant 0 : index
    %8 = vector.load %arg2[%c0_6, %c0_7] : memref<16x64xf32, #tpu.memory_space<vmem>>, vector<16x64xf32>
    %c0_8 = arith.constant 0 : index
    %c0_9 = arith.constant 0 : index
    %9 = vector.load %arg4[%c0_8, %c0_9] : memref<1x16xf32, #tpu.memory_space<vmem>>, vector<1x16xf32>
    %cst_10 = arith.constant 0.000000e+00 : f32
    %10 = vector.broadcast %cst_10 : f32 to vector<8x16xf32>
    %cst_11 = arith.constant 0.000000e+00 : f32
    %11 = vector.broadcast %cst_11 : f32 to vector<8x16xf32>
    %12 = vector.extract_strided_slice %7 {offsets = [0, 0, 0], sizes = [1, 8, 64], strides = [1, 1, 1]} : vector<8x8x64xf32> to vector<1x8x64xf32>
    %13 = vector.shape_cast %12 : vector<1x8x64xf32> to vector<8x64xf32>
    %cst_12 = arith.constant dense<0.000000e+00> : vector<8x64xf32>
    %14 = tpu.matmul %10, %8, %cst_12 {dimension_numbers = #tpu.dot_dimension_numbers<[1], [0], [0], [1], [0, 0, 1, 1], [], []>} : vector<8x16xf32>, vector<16x64xf32>, vector<8x64xf32> -> vector<8x64xf32>
    %15 = arith.addf %13, %14 : vector<8x64xf32>
    %16 = vector.extract_strided_slice %15 {offsets = [0, 0], sizes = [8, 16], strides = [1, 1]} : vector<8x64xf32> to vector<8x16xf32>
    %17 = arith.negf %16 : vector<8x16xf32>
    %18 = math.exp %17 : vector<8x16xf32>
    %cst_13 = arith.constant 1.000000e+00 : f32
    %19 = vector.broadcast %cst_13 : f32 to vector<8x16xf32>
    %20 = arith.addf %19, %18 : vector<8x16xf32>
    %21 = arith.divf %19, %20 : vector<8x16xf32>
    %22 = vector.extract_strided_slice %15 {offsets = [0, 16], sizes = [8, 16], strides = [1, 1]} : vector<8x64xf32> to vector<8x16xf32>
    %23 = arith.negf %22 : vector<8x16xf32>
    %24 = math.exp %23 : vector<8x16xf32>
    %cst_14 = arith.constant 1.000000e+00 : f32
    %25 = vector.broadcast %cst_14 : f32 to vector<8x16xf32>
    %26 = arith.addf %25, %24 : vector<8x16xf32>
    %27 = arith.divf %25, %26 : vector<8x16xf32>
    %28 = vector.extract_strided_slice %15 {offsets = [0, 32], sizes = [8, 16], strides = [1, 1]} : vector<8x64xf32> to vector<8x16xf32>
    %29 = arith.negf %28 : vector<8x16xf32>
    %30 = math.exp %29 : vector<8x16xf32>
    %cst_15 = arith.constant 1.000000e+00 : f32
    %31 = vector.broadcast %cst_15 : f32 to vector<8x16xf32>
    %32 = arith.addf %31, %30 : vector<8x16xf32>
    %33 = arith.divf %31, %32 : vector<8x16xf32>
    %34 = vector.extract_strided_slice %15 {offsets = [0, 48], sizes = [8, 16], strides = [1, 1]} : vector<8x64xf32> to vector<8x16xf32>
    %35 = math.tanh %34 : vector<8x16xf32>
    %36 = vector.broadcast %9 : vector<1x16xf32> to vector<8x16xf32>
    %37 = arith.mulf %11, %36 : vector<8x16xf32>
    %38 = arith.mulf %21, %37 : vector<8x16xf32>
    %39 = arith.mulf %27, %35 : vector<8x16xf32>
    %40 = arith.addf %38, %39 : vector<8x16xf32>
    %41 = math.tanh %40 : vector<8x16xf32>
    %42 = arith.mulf %33, %41 : vector<8x16xf32>
    %43 = vector.extract_strided_slice %7 {offsets = [1, 0, 0], sizes = [1, 8, 64], strides = [1, 1, 1]} : vector<8x8x64xf32> to vector<1x8x64xf32>
    %44 = vector.shape_cast %43 : vector<1x8x64xf32> to vector<8x64xf32>
    %cst_16 = arith.constant dense<0.000000e+00> : vector<8x64xf32>
    %45 = tpu.matmul %42, %8, %cst_16 {dimension_numbers = #tpu.dot_dimension_numbers<[1], [0], [0], [1], [0, 0, 1, 1], [], []>} : vector<8x16xf32>, vector<16x64xf32>, vector<8x64xf32> -> vector<8x64xf32>
    %46 = arith.addf %44, %45 : vector<8x64xf32>
    %47 = vector.extract_strided_slice %46 {offsets = [0, 0], sizes = [8, 16], strides = [1, 1]} : vector<8x64xf32> to vector<8x16xf32>
    %48 = arith.negf %47 : vector<8x16xf32>
    %49 = math.exp %48 : vector<8x16xf32>
    %cst_17 = arith.constant 1.000000e+00 : f32
    %50 = vector.broadcast %cst_17 : f32 to vector<8x16xf32>
    %51 = arith.addf %50, %49 : vector<8x16xf32>
    %52 = arith.divf %50, %51 : vector<8x16xf32>
    %53 = vector.extract_strided_slice %46 {offsets = [0, 16], sizes = [8, 16], strides = [1, 1]} : vector<8x64xf32> to vector<8x16xf32>
    %54 = arith.negf %53 : vector<8x16xf32>
    %55 = math.exp %54 : vector<8x16xf32>
    %cst_18 = arith.constant 1.000000e+00 : f32
    %56 = vector.broadcast %cst_18 : f32 to vector<8x16xf32>
    %57 = arith.addf %56, %55 : vector<8x16xf32>
    %58 = arith.divf %56, %57 : vector<8x16xf32>
    %59 = vector.extract_strided_slice %46 {offsets = [0, 32], sizes = [8, 16], strides = [1, 1]} : vector<8x64xf32> to vector<8x16xf32>
    %60 = arith.negf %59 : vector<8x16xf32>
    %61 = math.exp %60 : vector<8x16xf32>
    %cst_19 = arith.constant 1.000000e+00 : f32
    %62 = vector.broadcast %cst_19 : f32 to vector<8x16xf32>
    %63 = arith.addf %62, %61 : vector<8x16xf32>
    %64 = arith.divf %62, %63 : vector<8x16xf32>
    %65 = vector.extract_strided_slice %46 {offsets = [0, 48], sizes = [8, 16], strides = [1, 1]} : vector<8x64xf32> to vector<8x16xf32>
    %66 = math.tanh %65 : vector<8x16xf32>
    %67 = vector.broadcast %9 : vector<1x16xf32> to vector<8x16xf32>
    %68 = arith.mulf %40, %67 : vector<8x16xf32>
    %69 = arith.mulf %52, %68 : vector<8x16xf32>
    %70 = arith.mulf %58, %66 : vector<8x16xf32>
    %71 = arith.addf %69, %70 : vector<8x16xf32>
    %72 = math.tanh %71 : vector<8x16xf32>
    %73 = arith.mulf %64, %72 : vector<8x16xf32>
    %74 = vector.extract_strided_slice %7 {offsets = [2, 0, 0], sizes = [1, 8, 64], strides = [1, 1, 1]} : vector<8x8x64xf32> to vector<1x8x64xf32>
    %75 = vector.shape_cast %74 : vector<1x8x64xf32> to vector<8x64xf32>
    %cst_20 = arith.constant dense<0.000000e+00> : vector<8x64xf32>
    %76 = tpu.matmul %73, %8, %cst_20 {dimension_numbers = #tpu.dot_dimension_numbers<[1], [0], [0], [1], [0, 0, 1, 1], [], []>} : vector<8x16xf32>, vector<16x64xf32>, vector<8x64xf32> -> vector<8x64xf32>
    %77 = arith.addf %75, %76 : vector<8x64xf32>
    %78 = vector.extract_strided_slice %77 {offsets = [0, 0], sizes = [8, 16], strides = [1, 1]} : vector<8x64xf32> to vector<8x16xf32>
    %79 = arith.negf %78 : vector<8x16xf32>
    %80 = math.exp %79 : vector<8x16xf32>
    %cst_21 = arith.constant 1.000000e+00 : f32
    %81 = vector.broadcast %cst_21 : f32 to vector<8x16xf32>
    %82 = arith.addf %81, %80 : vector<8x16xf32>
    %83 = arith.divf %81, %82 : vector<8x16xf32>
    %84 = vector.extract_strided_slice %77 {offsets = [0, 16], sizes = [8, 16], strides = [1, 1]} : vector<8x64xf32> to vector<8x16xf32>
    %85 = arith.negf %84 : vector<8x16xf32>
    %86 = math.exp %85 : vector<8x16xf32>
    %cst_22 = arith.constant 1.000000e+00 : f32
    %87 = vector.broadcast %cst_22 : f32 to vector<8x16xf32>
    %88 = arith.addf %87, %86 : vector<8x16xf32>
    %89 = arith.divf %87, %88 : vector<8x16xf32>
    %90 = vector.extract_strided_slice %77 {offsets = [0, 32], sizes = [8, 16], strides = [1, 1]} : vector<8x64xf32> to vector<8x16xf32>
    %91 = arith.negf %90 : vector<8x16xf32>
    %92 = math.exp %91 : vector<8x16xf32>
    %cst_23 = arith.constant 1.000000e+00 : f32
    %93 = vector.broadcast %cst_23 : f32 to vector<8x16xf32>
    %94 = arith.addf %93, %92 : vector<8x16xf32>
    %95 = arith.divf %93, %94 : vector<8x16xf32>
    %96 = vector.extract_strided_slice %77 {offsets = [0, 48], sizes = [8, 16], strides = [1, 1]} : vector<8x64xf32> to vector<8x16xf32>
    %97 = math.tanh %96 : vector<8x16xf32>
    %98 = vector.broadcast %9 : vector<1x16xf32> to vector<8x16xf32>
    %99 = arith.mulf %71, %98 : vector<8x16xf32>
    %100 = arith.mulf %83, %99 : vector<8x16xf32>
    %101 = arith.mulf %89, %97 : vector<8x16xf32>
    %102 = arith.addf %100, %101 : vector<8x16xf32>
    %103 = math.tanh %102 : vector<8x16xf32>
    %104 = arith.mulf %95, %103 : vector<8x16xf32>
    %105 = vector.extract_strided_slice %7 {offsets = [3, 0, 0], sizes = [1, 8, 64], strides = [1, 1, 1]} : vector<8x8x64xf32> to vector<1x8x64xf32>
    %106 = vector.shape_cast %105 : vector<1x8x64xf32> to vector<8x64xf32>
    %cst_24 = arith.constant dense<0.000000e+00> : vector<8x64xf32>
    %107 = tpu.matmul %104, %8, %cst_24 {dimension_numbers = #tpu.dot_dimension_numbers<[1], [0], [0], [1], [0, 0, 1, 1], [], []>} : vector<8x16xf32>, vector<16x64xf32>, vector<8x64xf32> -> vector<8x64xf32>
    %108 = arith.addf %106, %107 : vector<8x64xf32>
    %109 = vector.extract_strided_slice %108 {offsets = [0, 0], sizes = [8, 16], strides = [1, 1]} : vector<8x64xf32> to vector<8x16xf32>
    %110 = arith.negf %109 : vector<8x16xf32>
    %111 = math.exp %110 : vector<8x16xf32>
    %cst_25 = arith.constant 1.000000e+00 : f32
    %112 = vector.broadcast %cst_25 : f32 to vector<8x16xf32>
    %113 = arith.addf %112, %111 : vector<8x16xf32>
    %114 = arith.divf %112, %113 : vector<8x16xf32>
    %115 = vector.extract_strided_slice %108 {offsets = [0, 16], sizes = [8, 16], strides = [1, 1]} : vector<8x64xf32> to vector<8x16xf32>
    %116 = arith.negf %115 : vector<8x16xf32>
    %117 = math.exp %116 : vector<8x16xf32>
    %cst_26 = arith.constant 1.000000e+00 : f32
    %118 = vector.broadcast %cst_26 : f32 to vector<8x16xf32>
    %119 = arith.addf %118, %117 : vector<8x16xf32>
    %120 = arith.divf %118, %119 : vector<8x16xf32>
    %121 = vector.extract_strided_slice %108 {offsets = [0, 32], sizes = [8, 16], strides = [1, 1]} : vector<8x64xf32> to vector<8x16xf32>
    %122 = arith.negf %121 : vector<8x16xf32>
    %123 = math.exp %122 : vector<8x16xf32>
    %cst_27 = arith.constant 1.000000e+00 : f32
    %124 = vector.broadcast %cst_27 : f32 to vector<8x16xf32>
    %125 = arith.addf %124, %123 : vector<8x16xf32>
    %126 = arith.divf %124, %125 : vector<8x16xf32>
    %127 = vector.extract_strided_slice %108 {offsets = [0, 48], sizes = [8, 16], strides = [1, 1]} : vector<8x64xf32> to vector<8x16xf32>
    %128 = math.tanh %127 : vector<8x16xf32>
    %129 = vector.broadcast %9 : vector<1x16xf32> to vector<8x16xf32>
    %130 = arith.mulf %102, %129 : vector<8x16xf32>
    %131 = arith.mulf %114, %130 : vector<8x16xf32>
    %132 = arith.mulf %120, %128 : vector<8x16xf32>
    %133 = arith.addf %131, %132 : vector<8x16xf32>
    %134 = math.tanh %133 : vector<8x16xf32>
    %135 = arith.mulf %126, %134 : vector<8x16xf32>
    %136 = vector.extract_strided_slice %7 {offsets = [4, 0, 0], sizes = [1, 8, 64], strides = [1, 1, 1]} : vector<8x8x64xf32> to vector<1x8x64xf32>
    %137 = vector.shape_cast %136 : vector<1x8x64xf32> to vector<8x64xf32>
    %cst_28 = arith.constant dense<0.000000e+00> : vector<8x64xf32>
    %138 = tpu.matmul %135, %8, %cst_28 {dimension_numbers = #tpu.dot_dimension_numbers<[1], [0], [0], [1], [0, 0, 1, 1], [], []>} : vector<8x16xf32>, vector<16x64xf32>, vector<8x64xf32> -> vector<8x64xf32>
    %139 = arith.addf %137, %138 : vector<8x64xf32>
    %140 = vector.extract_strided_slice %139 {offsets = [0, 0], sizes = [8, 16], strides = [1, 1]} : vector<8x64xf32> to vector<8x16xf32>
    %141 = arith.negf %140 : vector<8x16xf32>
    %142 = math.exp %141 : vector<8x16xf32>
    %cst_29 = arith.constant 1.000000e+00 : f32
    %143 = vector.broadcast %cst_29 : f32 to vector<8x16xf32>
    %144 = arith.addf %143, %142 : vector<8x16xf32>
    %145 = arith.divf %143, %144 : vector<8x16xf32>
    %146 = vector.extract_strided_slice %139 {offsets = [0, 16], sizes = [8, 16], strides = [1, 1]} : vector<8x64xf32> to vector<8x16xf32>
    %147 = arith.negf %146 : vector<8x16xf32>
    %148 = math.exp %147 : vector<8x16xf32>
    %cst_30 = arith.constant 1.000000e+00 : f32
    %149 = vector.broadcast %cst_30 : f32 to vector<8x16xf32>
    %150 = arith.addf %149, %148 : vector<8x16xf32>
    %151 = arith.divf %149, %150 : vector<8x16xf32>
    %152 = vector.extract_strided_slice %139 {offsets = [0, 32], sizes = [8, 16], strides = [1, 1]} : vector<8x64xf32> to vector<8x16xf32>
    %153 = arith.negf %152 : vector<8x16xf32>
    %154 = math.exp %153 : vector<8x16xf32>
    %cst_31 = arith.constant 1.000000e+00 : f32
    %155 = vector.broadcast %cst_31 : f32 to vector<8x16xf32>
    %156 = arith.addf %155, %154 : vector<8x16xf32>
    %157 = arith.divf %155, %156 : vector<8x16xf32>
    %158 = vector.extract_strided_slice %139 {offsets = [0, 48], sizes = [8, 16], strides = [1, 1]} : vector<8x64xf32> to vector<8x16xf32>
    %159 = math.tanh %158 : vector<8x16xf32>
    %160 = vector.broadcast %9 : vector<1x16xf32> to vector<8x16xf32>
    %161 = arith.mulf %133, %160 : vector<8x16xf32>
    %162 = arith.mulf %145, %161 : vector<8x16xf32>
    %163 = arith.mulf %151, %159 : vector<8x16xf32>
    %164 = arith.addf %162, %163 : vector<8x16xf32>
    %165 = math.tanh %164 : vector<8x16xf32>
    %166 = arith.mulf %157, %165 : vector<8x16xf32>
    %167 = vector.extract_strided_slice %7 {offsets = [5, 0, 0], sizes = [1, 8, 64], strides = [1, 1, 1]} : vector<8x8x64xf32> to vector<1x8x64xf32>
    %168 = vector.shape_cast %167 : vector<1x8x64xf32> to vector<8x64xf32>
    %cst_32 = arith.constant dense<0.000000e+00> : vector<8x64xf32>
    %169 = tpu.matmul %166, %8, %cst_32 {dimension_numbers = #tpu.dot_dimension_numbers<[1], [0], [0], [1], [0, 0, 1, 1], [], []>} : vector<8x16xf32>, vector<16x64xf32>, vector<8x64xf32> -> vector<8x64xf32>
    %170 = arith.addf %168, %169 : vector<8x64xf32>
    %171 = vector.extract_strided_slice %170 {offsets = [0, 0], sizes = [8, 16], strides = [1, 1]} : vector<8x64xf32> to vector<8x16xf32>
    %172 = arith.negf %171 : vector<8x16xf32>
    %173 = math.exp %172 : vector<8x16xf32>
    %cst_33 = arith.constant 1.000000e+00 : f32
    %174 = vector.broadcast %cst_33 : f32 to vector<8x16xf32>
    %175 = arith.addf %174, %173 : vector<8x16xf32>
    %176 = arith.divf %174, %175 : vector<8x16xf32>
    %177 = vector.extract_strided_slice %170 {offsets = [0, 16], sizes = [8, 16], strides = [1, 1]} : vector<8x64xf32> to vector<8x16xf32>
    %178 = arith.negf %177 : vector<8x16xf32>
    %179 = math.exp %178 : vector<8x16xf32>
    %cst_34 = arith.constant 1.000000e+00 : f32
    %180 = vector.broadcast %cst_34 : f32 to vector<8x16xf32>
    %181 = arith.addf %180, %179 : vector<8x16xf32>
    %182 = arith.divf %180, %181 : vector<8x16xf32>
    %183 = vector.extract_strided_slice %170 {offsets = [0, 32], sizes = [8, 16], strides = [1, 1]} : vector<8x64xf32> to vector<8x16xf32>
    %184 = arith.negf %183 : vector<8x16xf32>
    %185 = math.exp %184 : vector<8x16xf32>
    %cst_35 = arith.constant 1.000000e+00 : f32
    %186 = vector.broadcast %cst_35 : f32 to vector<8x16xf32>
    %187 = arith.addf %186, %185 : vector<8x16xf32>
    %188 = arith.divf %186, %187 : vector<8x16xf32>
    %189 = vector.extract_strided_slice %170 {offsets = [0, 48], sizes = [8, 16], strides = [1, 1]} : vector<8x64xf32> to vector<8x16xf32>
    %190 = math.tanh %189 : vector<8x16xf32>
    %191 = vector.broadcast %9 : vector<1x16xf32> to vector<8x16xf32>
    %192 = arith.mulf %164, %191 : vector<8x16xf32>
    %193 = arith.mulf %176, %192 : vector<8x16xf32>
    %194 = arith.mulf %182, %190 : vector<8x16xf32>
    %195 = arith.addf %193, %194 : vector<8x16xf32>
    %196 = math.tanh %195 : vector<8x16xf32>
    %197 = arith.mulf %188, %196 : vector<8x16xf32>
    %198 = vector.extract_strided_slice %7 {offsets = [6, 0, 0], sizes = [1, 8, 64], strides = [1, 1, 1]} : vector<8x8x64xf32> to vector<1x8x64xf32>
    %199 = vector.shape_cast %198 : vector<1x8x64xf32> to vector<8x64xf32>
    %cst_36 = arith.constant dense<0.000000e+00> : vector<8x64xf32>
    %200 = tpu.matmul %197, %8, %cst_36 {dimension_numbers = #tpu.dot_dimension_numbers<[1], [0], [0], [1], [0, 0, 1, 1], [], []>} : vector<8x16xf32>, vector<16x64xf32>, vector<8x64xf32> -> vector<8x64xf32>
    %201 = arith.addf %199, %200 : vector<8x64xf32>
    %202 = vector.extract_strided_slice %201 {offsets = [0, 0], sizes = [8, 16], strides = [1, 1]} : vector<8x64xf32> to vector<8x16xf32>
    %203 = arith.negf %202 : vector<8x16xf32>
    %204 = math.exp %203 : vector<8x16xf32>
    %cst_37 = arith.constant 1.000000e+00 : f32
    %205 = vector.broadcast %cst_37 : f32 to vector<8x16xf32>
    %206 = arith.addf %205, %204 : vector<8x16xf32>
    %207 = arith.divf %205, %206 : vector<8x16xf32>
    %208 = vector.extract_strided_slice %201 {offsets = [0, 16], sizes = [8, 16], strides = [1, 1]} : vector<8x64xf32> to vector<8x16xf32>
    %209 = arith.negf %208 : vector<8x16xf32>
    %210 = math.exp %209 : vector<8x16xf32>
    %cst_38 = arith.constant 1.000000e+00 : f32
    %211 = vector.broadcast %cst_38 : f32 to vector<8x16xf32>
    %212 = arith.addf %211, %210 : vector<8x16xf32>
    %213 = arith.divf %211, %212 : vector<8x16xf32>
    %214 = vector.extract_strided_slice %201 {offsets = [0, 32], sizes = [8, 16], strides = [1, 1]} : vector<8x64xf32> to vector<8x16xf32>
    %215 = arith.negf %214 : vector<8x16xf32>
    %216 = math.exp %215 : vector<8x16xf32>
    %cst_39 = arith.constant 1.000000e+00 : f32
    %217 = vector.broadcast %cst_39 : f32 to vector<8x16xf32>
    %218 = arith.addf %217, %216 : vector<8x16xf32>
    %219 = arith.divf %217, %218 : vector<8x16xf32>
    %220 = vector.extract_strided_slice %201 {offsets = [0, 48], sizes = [8, 16], strides = [1, 1]} : vector<8x64xf32> to vector<8x16xf32>
    %221 = math.tanh %220 : vector<8x16xf32>
    %222 = vector.broadcast %9 : vector<1x16xf32> to vector<8x16xf32>
    %223 = arith.mulf %195, %222 : vector<8x16xf32>
    %224 = arith.mulf %207, %223 : vector<8x16xf32>
    %225 = arith.mulf %213, %221 : vector<8x16xf32>
    %226 = arith.addf %224, %225 : vector<8x16xf32>
    %227 = math.tanh %226 : vector<8x16xf32>
    %228 = arith.mulf %219, %227 : vector<8x16xf32>
    %229 = vector.extract_strided_slice %7 {offsets = [7, 0, 0], sizes = [1, 8, 64], strides = [1, 1, 1]} : vector<8x8x64xf32> to vector<1x8x64xf32>
    %230 = vector.shape_cast %229 : vector<1x8x64xf32> to vector<8x64xf32>
    %cst_40 = arith.constant dense<0.000000e+00> : vector<8x64xf32>
    %231 = tpu.matmul %228, %8, %cst_40 {dimension_numbers = #tpu.dot_dimension_numbers<[1], [0], [0], [1], [0, 0, 1, 1], [], []>} : vector<8x16xf32>, vector<16x64xf32>, vector<8x64xf32> -> vector<8x64xf32>
    %232 = arith.addf %230, %231 : vector<8x64xf32>
    %233 = vector.extract_strided_slice %232 {offsets = [0, 0], sizes = [8, 16], strides = [1, 1]} : vector<8x64xf32> to vector<8x16xf32>
    %234 = arith.negf %233 : vector<8x16xf32>
    %235 = math.exp %234 : vector<8x16xf32>
    %cst_41 = arith.constant 1.000000e+00 : f32
    %236 = vector.broadcast %cst_41 : f32 to vector<8x16xf32>
    %237 = arith.addf %236, %235 : vector<8x16xf32>
    %238 = arith.divf %236, %237 : vector<8x16xf32>
    %239 = vector.extract_strided_slice %232 {offsets = [0, 16], sizes = [8, 16], strides = [1, 1]} : vector<8x64xf32> to vector<8x16xf32>
    %240 = arith.negf %239 : vector<8x16xf32>
    %241 = math.exp %240 : vector<8x16xf32>
    %cst_42 = arith.constant 1.000000e+00 : f32
    %242 = vector.broadcast %cst_42 : f32 to vector<8x16xf32>
    %243 = arith.addf %242, %241 : vector<8x16xf32>
    %244 = arith.divf %242, %243 : vector<8x16xf32>
    %245 = vector.extract_strided_slice %232 {offsets = [0, 32], sizes = [8, 16], strides = [1, 1]} : vector<8x64xf32> to vector<8x16xf32>
    %246 = arith.negf %245 : vector<8x16xf32>
    %247 = math.exp %246 : vector<8x16xf32>
    %cst_43 = arith.constant 1.000000e+00 : f32
    %248 = vector.broadcast %cst_43 : f32 to vector<8x16xf32>
    %249 = arith.addf %248, %247 : vector<8x16xf32>
    %250 = arith.divf %248, %249 : vector<8x16xf32>
    %251 = vector.extract_strided_slice %232 {offsets = [0, 48], sizes = [8, 16], strides = [1, 1]} : vector<8x64xf32> to vector<8x16xf32>
    %252 = math.tanh %251 : vector<8x16xf32>
    %253 = vector.broadcast %9 : vector<1x16xf32> to vector<8x16xf32>
    %254 = arith.mulf %226, %253 : vector<8x16xf32>
    %255 = arith.mulf %238, %254 : vector<8x16xf32>
    %256 = arith.mulf %244, %252 : vector<8x16xf32>
    %257 = arith.addf %255, %256 : vector<8x16xf32>
    %258 = math.tanh %257 : vector<8x16xf32>
    %259 = arith.mulf %250, %258 : vector<8x16xf32>
    %c0_44 = arith.constant 0 : index
    %c0_45 = arith.constant 0 : index
    %c0_46 = arith.constant 0 : index
    %260 = vector.load %arg5[%c0_44, %c0_45, %c0_46] : memref<1x8x16xf32, #tpu.memory_space<vmem>>, vector<1x8x16xf32>
    %261 = vector.shape_cast %260 : vector<1x8x16xf32> to vector<8x16xf32>
    %c0_47 = arith.constant 0 : index
    %c0_48 = arith.constant 0 : index
    %262 = memref.load %arg6[%c0_47, %c0_48] : memref<1x1xf32, #tpu.memory_space<smem>>
    %263 = vector.broadcast %262 : f32 to vector<8x16xf32>
    %264 = arith.mulf %259, %263 : vector<8x16xf32>
    %265 = arith.addf %261, %264 : vector<8x16xf32>
    %c0_49 = arith.constant 0 : index
    %c0_50 = arith.constant 0 : index
    %c0_51 = arith.constant 0 : index
    %266 = vector.load %arg7[%c0_49, %c0_50, %c0_51] : memref<1x8x16xf32, #tpu.memory_space<vmem>>, vector<1x8x16xf32>
    %267 = vector.shape_cast %266 : vector<1x8x16xf32> to vector<8x16xf32>
    %268 = vector.shape_cast %265 : vector<8x16xf32> to vector<1x8x16xf32>
    tpu.vector_store %arg7[%c0_49, %c0_50, %c0_51], %268 {strides = array<i32>} : memref<1x8x16xf32, #tpu.memory_space<vmem>>, vector<1x8x16xf32>,
    return
  }
}

</mosaic_0001>

<bundles_post_ra>
// kernel: gclstm_forward.1
= control target key start
LH: loop header
LB: loop body
LE: loop exit
PB: predicated region body
PF: predicated region fallthrough
CT: control target
= control target key end

     0   :  { %vm45_vm0 = vcmask 130048   ;;  %v1237_v3 = vmov 0.0   ;;  %s1458_s0 = inlined_call_operand.vmem [shape: f32[8,8,16], index: 0, kind: input, shape index: {}]   ;;  %s1459_s1 = inlined_call_operand.vmem [shape: f32[16,64], index: 1, kind: input, shape index: {}]   ;;  %s1460_s2 = inlined_call_operand.vmem [shape: f32[16,64], index: 2, kind: input, shape index: {}]   ;;  %s1461_s3 = inlined_call_operand.vmem [shape: f32[1,64], index: 3, kind: input, shape index: {}]   ;;  %s1462_s4 = inlined_call_operand.vmem [shape: f32[1,16], index: 4, kind: input, shape index: {}]   ;;  %s1463_s5 = inlined_call_operand.vmem [shape: f32[1,8,16], index: 5, kind: input, shape index: {}]   ;;  %s1464_s6 = inlined_call_operand.<no memory space> [shape: f32[1,1], index: 6, kind: input, shape index: {}]   ;;  %s1465_s7 = inlined_call_operand.hbm [shape: f32[1,8,16], index: 7, kind: output, shape index: {}]  }
   0x1   :  { %v37_v0 = vld [vmem:[%s1459_s1 + $0x8] sm:$0xff]  ;;  %v36_v1 = vld [vmem:[%s1459_s1] sm:$0xff]  ;;  %1089 = vmatprep.subr.mxu1 %v1237_v3 }
   0x2   :  { %v28_v2 = vld [vmem:[%s1458_s0] sm:$0xff]  ;;  %1073 = vmatprep.subr.mxu0 %v37_v0  ;;  %v1296_v4 = vld [vmem:[%s1460_s2 + $0x8] sm:$0xff] }
   0x3   :  { %1074 = vmatpush3.msra.mxu0 %v37_v0  ;;  %1077 = vmatprep.mubr.msk.f32.mxu0 %vm45_vm0, %v28_v2  ;;  %v29_v5 = vld [vmem:[%s1458_s0 + $0x8] sm:$0xff]  ;;  %v1305_v6 = vld [vmem:[%s1460_s2] sm:$0xff] }
   0x4   :  { %13 = vsyncpa [#allocation4], 0  ;;  %1075 = vmatprep.subr.mxu0 %v36_v1  ;;  %1090 = vmatpush3.msra.mxu1 %v1296_v4  ;;  %vm1238_vm1 = vmmov 0   ;;  %v1329_v8 = vld [vmem:[%s1461_s3] ss:$0 sm:$0xff]  ;;  %s1239_s13 = smov 96  }
   0x5   :  { %1076 = vmatpush3.msra.mxu0 %v36_v1  ;;  %1091 = vmatprep.subr.mxu1 %v1237_v3  ;;  %s1240_s3 = smov 112   ;;  %v1337_v21 = vld [vmem:[%s1462_s4] ss:$0 sm:$0xff]  ;;  %s1241_s16 = smov 32   ;;  %v30_v45 = vld [vmem:[%s1458_s0 + $0x10] sm:$0xff]  ;;  %v31_v46 = vld [vmem:[%s1458_s0 + $0x18] sm:$0xff] }
   0x6   :  { %1078 = vmatmul.mubr.msk.f32.vlgmr.msra.gmra.mxu0 %vm45_vm0, %v29_v5  ;;  %1092 = vmatpush3.msra.mxu1 %v1305_v6  ;;  %v265_v22 = vmul.f32 0.0, %v1337_v21  ;;  %s1242_s8 = smov [#allocation3]  }
   0x7   :  { %1093 = vmatprep.mubr.msk.f32.mxu1 %vm1238_vm1, %v1237_v3  ;;  %1096 = vmatprep.subr.mxu1 %v1237_v3  ;;  %s1006_s9 = sshll.u32 %s1242_s8, 4  ;;  %s1007_s9 = int_to_ptr.vmem [resolvable:$true] %s1006_s9 }
   0x8   :  { %1094 = vmatmul.mubr.f32.vlgmr.msra.gmra.mxu1 %v1237_v3  ;;  %1117 = vmatprep.subr.mxu0 %v1237_v3  ;;  %s1215_s10 = scalar_lea.vmem %s1007_s9, 128  ;;  %p1220_p1 = scmp.lt.s32.totalorder %s1007_s9, %s1007_s9 }
   0x9   :  { %1097 = vmatpush3.msra.mxu1 %v1296_v4  ;;  %1100 = vmatprep.mubr.msk.f32.mxu1 %vm1238_vm1, %v1237_v3  ;;  %p1216_p0 = scmp.ne.s32.totalorder %s1007_s9, %s1215_s10  ;;  %p1221_p2 = scmp.lt.s32.totalorder %s1215_s10, %s1215_s10 }
   0xa   :  { %1098 = vmatprep.subr.mxu1 %v1237_v3  ;;  %1118 = vmatpush3.msra.mxu0 %v1296_v4 }
   0xb   :  { %1099 = vmatpush3.msra.mxu1 %v1305_v6  ;;  %1119 = vmatprep.subr.mxu0 %v1237_v3  ;;  %p1222_p3 = por %p1221_p2, %p1220_p1 }
   0xc   :  { %1103 = vmatprep.subr.mxu1 %v1237_v3  ;;  %1120 = vmatpush3.msra.mxu0 %v1305_v6 }
   0xd   :  { %1131 = vmatprep.subr.mxu0 %v1237_v3  ;;  %1080 = vmatprep.mubr.msk.f32.mxu0 %vm45_vm0, %v30_v45  ;;  %p1223_p4 = pnand %p1222_p3, %p1216_p0 }
   0xe   :  { %1081 = vmatmul.mubr.msk.f32.gmra.mxu0 %vm45_vm0, %v31_v46 }
  0xc6   :  { %v1079_v7 = vpop.f32.mrf.mxu0 }
  0xc7   :  { %v142_v30 = vadd.f32 %v1079_v7, %v1329_v8 }
  0xc8   :  { %v136_v9 = vpop.f32.mrf.mxu0  ;;  %v247_v10 = vpop.f32.mrf.mxu1 }
  0xc9   :  { %v137_v11 = vadd.f32 %v1329_v8, %v136_v9 }
  0xca   :  { %v1095_v12 = vpop.f32.mrf.mxu1 }
  0xcb   :  { %v251_v13 = vadd.f32 %v247_v10, %v137_v11 }
  0xcd   :  { %1151 = vtanh.f32 %v251_v13  ;;  %v1023_v15 = vmul.f32 -1.442695, %v251_v13 }
  0xce   :  { %v1082_v51 = vpop.f32.mrf.mxu0 }
  0xcf   :  { %1153 = vpow2.f32 %v1023_v15  ;;  %v152_v12 = vadd.f32 %v1082_v51, %v1329_v8 }
  0xd0   :  { %v146_v52 = vpop.f32.mrf.mxu0 }
  0xd1   :  { %v147_v53 = vadd.f32 %v1329_v8, %v146_v52 }
  0xda   :  { %v1152_v14 = vpop.eup %1151 }
  0xdb   :  { %268 = vrot.lane.b32.xlu0 %v1152_v14, %s1239_s13 }
  0xdc   :  { %v1154_v16 = vpop.eup %1153 }
  0xdd   :  { %v255_v17 = vadd.f32 1.0, %v1154_v16 }
  0xdf   :  { %1155 = vrcp.f32 %v255_v17 }
  0xec   :  { %v1156_v18 = vpop.eup %1155 }
  0xed   :  { %v266_v23 = vmul.f32 %v1156_v18, %v265_v22 }
 0x14d   :  { %v269_v19 = vpop.permute.xlu0 %268 }
 0x14e   :  { %v271_v20 = vmul.f32 %v1156_v18, %v269_v19 }
 0x150   :  { %273 = vrot.lane.b32.xlu0 %v271_v20, %s1240_s3 }
 0x1c2   :  { %v274_v24 = vpop.permute.xlu0 %273 }
 0x1c3   :  { %v276_v25 = vadd.f32 %v274_v24, %v266_v23 }
 0x1c5   :  { %1157 = vtanh.f32 %v276_v25  ;;  %v366_v41 = vmul.f32 %v1337_v21, %v276_v25 }
 0x1d2   :  { %v1158_v26 = vpop.eup %1157 }
 0x1d3   :  { %279 = vrot.lane.b32.xlu1 %v1158_v26, %s1241_s16 }
 0x245   :  { %v280_v27 = vpop.permute.xlu1 %279 }
 0x246   :  { %v282_v28 = vmul.f32 %v1156_v18, %v280_v27 }
 0x248   :  { %284 = vrot.lane.b32.xlu1 %v282_v28, %s1239_s13  ;;  %v32_v28 = vld [vmem:[%s1458_s0 + $0x20] sm:$0xff] }
 0x249   :  { %1083 = vmatprep.mubr.msk.f32.mxu0 %vm45_vm0, %v32_v28 }
 0x2ba   :  { %v285_v29 = vpop.permute.xlu1 %284 }
 0x2bb   :  { %1101 = vmatmul.mubr.msk.f32.vlgmr.msra.gmra.mxu1 %vm45_vm0, %v285_v29  ;;  %v33_v29 = vld [vmem:[%s1458_s0 + $0x28] sm:$0xff] }
 0x2bc   :  { %1104 = vmatpush3.msra.mxu1 %v1296_v4  ;;  %1107 = vmatprep.mubr.msk.f32.mxu1 %vm1238_vm1, %v1237_v3 }
 0x2bd   :  { %1105 = vmatprep.subr.mxu1 %v1237_v3  ;;  %1084 = vmatmul.mubr.msk.f32.gmra.mxu0 %vm45_vm0, %v33_v29 }
 0x2be   :  { %1106 = vmatpush3.msra.mxu1 %v1305_v6 }
 0x2bf   :  { %1110 = vmatprep.subr.mxu1 %v1237_v3 }
 0x37b   :  { %v354_v31 = vpop.f32.mrf.mxu1 }
 0x37c   :  { %v358_v32 = vadd.f32 %v354_v31, %v142_v30  ;;  %v34_v30 = vld [vmem:[%s1458_s0 + $0x30] sm:$0xff]  ;;  %v35_v31 = vld [vmem:[%s1458_s0 + $0x38] sm:$0xff] }
 0x37d   :  { %v1102_v33 = vpop.f32.mrf.mxu1  ;;  %1086 = vmatprep.mubr.msk.f32.mxu0 %vm45_vm0, %v34_v30 }
 0x37e   :  { %1159 = vtanh.f32 %v358_v32  ;;  %v1026_v35 = vmul.f32 -1.442695, %v358_v32  ;;  %1087 = vmatmul.mubr.msk.f32.gmra.mxu0 %vm45_vm0, %v35_v31 }
 0x37f   :  { %1121 = vmatprep.mubr.msk.f32.mxu0 %vm1238_vm1, %v1237_v3 }
 0x380   :  { %1161 = vpow2.f32 %v1026_v35 }
 0x38b   :  { %v1160_v34 = vpop.eup %1159 }
 0x38c   :  { %369 = vrot.lane.b32.xlu0 %v1160_v34, %s1239_s13 }
 0x38d   :  { %v1162_v36 = vpop.eup %1161 }
 0x38e   :  { %v362_v37 = vadd.f32 1.0, %v1162_v36  ;;  %v1085_v36 = vpop.f32.mrf.mxu0 }
 0x390   :  { %1163 = vrcp.f32 %v362_v37  ;;  %v156_v37 = vpop.f32.mrf.mxu0 }
 0x39d   :  { %v1164_v38 = vpop.eup %1163 }
 0x39e   :  { %v367_v42 = vmul.f32 %v1164_v38, %v366_v41 }
 0x3fe   :  { %v370_v39 = vpop.permute.xlu0 %369 }
 0x3ff   :  { %v372_v40 = vmul.f32 %v1164_v38, %v370_v39 }
 0x401   :  { %374 = vrot.lane.b32.xlu1 %v372_v40, %s1240_s3  ;;  %v157_v40 = vadd.f32 %v1329_v8, %v156_v37 }
 0x473   :  { %v375_v43 = vpop.permute.xlu1 %374 }
 0x474   :  { %v377_v44 = vadd.f32 %v375_v43, %v367_v42 }
 0x476   :  { %1165 = vtanh.f32 %v377_v44  ;;  %v467_v0 = vmul.f32 %v1337_v21, %v377_v44 }
 0x483   :  { %v1166_v47 = vpop.eup %1165 }
 0x484   :  { %380 = vrot.lane.b32.xlu0 %v1166_v47, %s1241_s16 }
 0x4f6   :  { %v381_v48 = vpop.permute.xlu0 %380 }
 0x4f7   :  { %v383_v49 = vmul.f32 %v1164_v38, %v381_v48  ;;  %v1413_v38 = vpop.f32.mrf.mxu0 }
 0x4f9   :  { %385 = vrot.lane.b32.xlu1 %v383_v49, %s1239_s13  ;;  %v166_v39 = vpop.f32.mrf.mxu0 }
 0x56b   :  { %v386_v50 = vpop.permute.xlu1 %385 }
 0x56c   :  { %1108 = vmatmul.mubr.msk.f32.vlgmr.msra.gmra.mxu1 %vm45_vm0, %v386_v50 }
 0x56d   :  { %1111 = vmatpush3.msra.mxu1 %v1296_v4  ;;  %1114 = vmatprep.mubr.msk.f32.mxu1 %vm1238_vm1, %v1237_v3 }
 0x56e   :  { %1112 = vmatprep.subr.mxu1 %v1237_v3 }
 0x56f   :  { %1113 = vmatpush3.msra.mxu1 %v1305_v6 }
 0x570   :  { %1124 = vmatprep.subr.mxu1 %v1237_v3 }
 0x62c   :  { %v455_v54 = vpop.f32.mrf.mxu1 }
 0x62d   :  { %v459_v55 = vadd.f32 %v455_v54, %v147_v53 }
 0x62e   :  { %v1109_v56 = vpop.f32.mrf.mxu1 }
 0x62f   :  { %1167 = vtanh.f32 %v459_v55  ;;  %v1028_v58 = vmul.f32 -1.442695, %v459_v55 }
 0x631   :  { %1169 = vpow2.f32 %v1028_v58 }
 0x63c   :  { %v1168_v57 = vpop.eup %1167 }
 0x63d   :  { %470 = vrot.lane.b32.xlu0 %v1168_v57, %s1239_s13 }
 0x63e   :  { %v1170_v59 = vpop.eup %1169 }
 0x63f   :  { %v463_v60 = vadd.f32 1.0, %v1170_v59  ;;  %v162_v59 = vadd.f32 %v1085_v36, %v1329_v8 }
 0x641   :  { %1171 = vrcp.f32 %v463_v60 }
 0x64e   :  { %v1172_v61 = vpop.eup %1171 }
 0x64f   :  { %v468_v1 = vmul.f32 %v1172_v61, %v467_v0 }
 0x6af   :  { %v471_v62 = vpop.permute.xlu0 %470 }
 0x6b0   :  { %v473_v63 = vmul.f32 %v1172_v61, %v471_v62 }
 0x6b2   :  { %475 = vrot.lane.b32.xlu1 %v473_v63, %s1240_s3 }
 0x724   :  { %v476_v2 = vpop.permute.xlu1 %475 }
 0x725   :  { %v478_v5 = vadd.f32 %v476_v2, %v468_v1 }
 0x727   :  { %1173 = vtanh.f32 %v478_v5  ;;  %v568_v24 = vmul.f32 %v1337_v21, %v478_v5 }
 0x734   :  { %v1174_v7 = vpop.eup %1173 }
 0x735   :  { %481 = vrot.lane.b32.xlu0 %v1174_v7, %s1241_s16 }
 0x7a7   :  { %v482_v9 = vpop.permute.xlu0 %481 }
 0x7a8   :  { %v484_v10 = vmul.f32 %v1172_v61, %v482_v9 }
 0x7aa   :  { %486 = vrot.lane.b32.xlu1 %v484_v10, %s1239_s13 }
 0x81c   :  { %v487_v11 = vpop.permute.xlu1 %486 }
 0x81d   :  { %1115 = vmatmul.mubr.msk.f32.vlgmr.msra.gmra.mxu1 %vm45_vm0, %v487_v11 }
 0x81e   :  { %1125 = vmatpush3.msra.mxu1 %v1296_v4  ;;  %1128 = vmatprep.mubr.msk.f32.mxu1 %vm1238_vm1, %v1237_v3 }
 0x81f   :  { %1126 = vmatprep.subr.mxu1 %v1237_v3 }
 0x820   :  { %1127 = vmatpush3.msra.mxu1 %v1305_v6 }
 0x821   :  { %1138 = vmatprep.subr.mxu1 %v1237_v3 }
 0x8dd   :  { %v556_v13 = vpop.f32.mrf.mxu1 }
 0x8de   :  { %v560_v14 = vadd.f32 %v556_v13, %v152_v12 }
 0x8df   :  { %v1116_v15 = vpop.f32.mrf.mxu1 }
 0x8e0   :  { %1175 = vtanh.f32 %v560_v14  ;;  %v1030_v17 = vmul.f32 -1.442695, %v560_v14  ;;  %v167_v15 = vadd.f32 %v1329_v8, %v166_v39 }
 0x8e2   :  { %1177 = vpow2.f32 %v1030_v17 }
 0x8ed   :  { %v1176_v16 = vpop.eup %1175 }
 0x8ee   :  { %571 = vrot.lane.b32.xlu0 %v1176_v16, %s1239_s13 }
 0x8ef   :  { %v1178_v18 = vpop.eup %1177 }
 0x8f0   :  { %v564_v19 = vadd.f32 1.0, %v1178_v18 }
 0x8f2   :  { %1179 = vrcp.f32 %v564_v19 }
 0x8ff   :  { %v1180_v20 = vpop.eup %1179 }
 0x900   :  { %v569_v25 = vmul.f32 %v1180_v20, %v568_v24 }
 0x960   :  { %v572_v22 = vpop.permute.xlu0 %571 }
 0x961   :  { %v574_v23 = vmul.f32 %v1180_v20, %v572_v22 }
 0x963   :  { %576 = vrot.lane.b32.xlu1 %v574_v23, %s1240_s3 }
 0x9d5   :  { %v577_v26 = vpop.permute.xlu1 %576 }
 0x9d6   :  { %v579_v27 = vadd.f32 %v577_v26, %v569_v25 }
 0x9d8   :  { %1181 = vtanh.f32 %v579_v27  ;;  %v669_v51 = vmul.f32 %v1337_v21, %v579_v27 }
 0x9e5   :  { %v1182_v32 = vpop.eup %1181 }
 0x9e6   :  { %582 = vrot.lane.b32.xlu0 %v1182_v32, %s1241_s16 }
 0xa58   :  { %v583_v33 = vpop.permute.xlu0 %582 }
 0xa59   :  { %v585_v34 = vmul.f32 %v1180_v20, %v583_v33 }
 0xa5b   :  { %587 = vrot.lane.b32.xlu1 %v585_v34, %s1239_s13 }
 0xacd   :  { %v588_v35 = vpop.permute.xlu1 %587 }
 0xace   :  { %1122 = vmatmul.mubr.msk.f32.vlgmr.msra.gmra.mxu0 %vm45_vm0, %v588_v35  ;;  %v172_v35 = vadd.f32 %v1413_v38, %v1329_v8 }
 0xacf   :  { %1132 = vmatpush3.msra.mxu0 %v1296_v4  ;;  %1135 = vmatprep.mubr.msk.f32.mxu0 %vm1238_vm1, %v1237_v3 }
 0xad0   :  { %1133 = vmatprep.subr.mxu0 %v1237_v3 }
 0xad1   :  { %1134 = vmatpush3.msra.mxu0 %v1305_v6 }
 0xb8e   :  { %v657_v41 = vpop.f32.mrf.mxu0 }
 0xb8f   :  { %v661_v42 = vadd.f32 %v657_v41, %v157_v40 }
 0xb90   :  { %v1123_v43 = vpop.f32.mrf.mxu0 }
 0xb91   :  { %1183 = vtanh.f32 %v661_v42  ;;  %v1032_v45 = vmul.f32 -1.442695, %v661_v42 }
 0xb93   :  { %1185 = vpow2.f32 %v1032_v45 }
 0xb9e   :  { %v1184_v44 = vpop.eup %1183 }
 0xb9f   :  { %672 = vrot.lane.b32.xlu0 %v1184_v44, %s1239_s13 }
 0xba0   :  { %v1186_v46 = vpop.eup %1185 }
 0xba1   :  { %v665_v47 = vadd.f32 1.0, %v1186_v46 }
 0xba3   :  { %1187 = vrcp.f32 %v665_v47 }
 0xbb0   :  { %v1188_v48 = vpop.eup %1187 }
 0xbb1   :  { %v670_v52 = vmul.f32 %v1188_v48, %v669_v51 }
 0xc11   :  { %v673_v49 = vpop.permute.xlu0 %672 }
 0xc12   :  { %v675_v50 = vmul.f32 %v1188_v48, %v673_v49 }
 0xc14   :  { %677 = vrot.lane.b32.xlu1 %v675_v50, %s1240_s3  ;;  %v992_v50 = vstv %s1464_s6 }
 0xc86   :  { %v678_v53 = vpop.permute.xlu1 %677 }
 0xc87   :  { %v680_v54 = vadd.f32 %v678_v53, %v670_v52 }
 0xc89   :  { %1189 = vtanh.f32 %v680_v54 }
 0xc96   :  { %v1190_v55 = vpop.eup %1189 }
 0xc97   :  { %683 = vrot.lane.b32.xlu0 %v1190_v55, %s1241_s16 }
 0xd09   :  { %v684_v56 = vpop.permute.xlu0 %683 }
 0xd0a   :  { %v686_v57 = vmul.f32 %v1188_v48, %v684_v56 }
 0xd0c   :  { %688 = vrot.lane.b32.xlu1 %v686_v57, %s1239_s13 }
 0xd7e   :  { %v689_v58 = vpop.permute.xlu1 %688 }
 0xd7f   :  { %1129 = vmatmul.mubr.msk.f32.vlgmr.msra.gmra.mxu1 %vm45_vm0, %v689_v58 }
 0xd80   :  { %1139 = vmatpush3.msra.mxu1 %v1296_v4  ;;  %1142 = vmatprep.mubr.msk.f32.mxu1 %vm1238_vm1, %v1237_v3 }
 0xd81   :  { %1140 = vmatprep.subr.mxu1 %v1237_v3  ;;  %v770_v3 = vmul.f32 %v1337_v21, %v680_v54 }
 0xd82   :  { %1141 = vmatpush3.msra.mxu1 %v1305_v6 }
 0xe3f   :  { %v758_v60 = vpop.f32.mrf.mxu1 }
 0xe40   :  { %v762_v61 = vadd.f32 %v758_v60, %v162_v59 }
 0xe41   :  { %v1130_v62 = vpop.f32.mrf.mxu1 }
 0xe42   :  { %1191 = vtanh.f32 %v762_v61  ;;  %v1034_v0 = vmul.f32 -1.442695, %v762_v61 }
 0xe44   :  { %1193 = vpow2.f32 %v1034_v0 }
 0xe4f   :  { %v1192_v63 = vpop.eup %1191 }
 0xe50   :  { %773 = vrot.lane.b32.xlu0 %v1192_v63, %s1239_s13 }
 0xe51   :  { %v1194_v1 = vpop.eup %1193 }
 0xe52   :  { %v766_v4 = vadd.f32 1.0, %v1194_v1 }
 0xe54   :  { %1195 = vrcp.f32 %v766_v4 }
 0xe61   :  { %v1196_v2 = vpop.eup %1195 }
 0xe62   :  { %v771_v6 = vmul.f32 %v1196_v2, %v770_v3 }
 0xec2   :  { %v774_v5 = vpop.permute.xlu0 %773 }
 0xec3   :  { %v776_v7 = vmul.f32 %v1196_v2, %v774_v5 }
 0xec5   :  { %778 = vrot.lane.b32.xlu1 %v776_v7, %s1240_s3 }
 0xf37   :  { %v779_v9 = vpop.permute.xlu1 %778 }
 0xf38   :  { %v781_v10 = vadd.f32 %v779_v9, %v771_v6 }
 0xf3a   :  { %1197 = vtanh.f32 %v781_v10  ;;  %v871_v27 = vmul.f32 %v1337_v21, %v781_v10 }
 0xf47   :  { %v1198_v11 = vpop.eup %1197 }
 0xf48   :  { %784 = vrot.lane.b32.xlu0 %v1198_v11, %s1241_s16 }
 0xfba   :  { %v785_v12 = vpop.permute.xlu0 %784 }
 0xfbb   :  { %v787_v13 = vmul.f32 %v1196_v2, %v785_v12 }
 0xfbd   :  { %789 = vrot.lane.b32.xlu1 %v787_v13, %s1239_s13 }
0x102f   :  { %v790_v14 = vpop.permute.xlu1 %789 }
0x1030   :  { %1136 = vmatmul.mubr.msk.f32.vlgmr.msra.gmra.mxu0 %vm45_vm0, %v790_v14 }
0x10f0   :  { %v859_v16 = vpop.f32.mrf.mxu0 }
0x10f1   :  { %v863_v17 = vadd.f32 %v859_v16, %v167_v15 }
0x10f2   :  { %v1137_v18 = vpop.f32.mrf.mxu0 }
0x10f3   :  { %1199 = vtanh.f32 %v863_v17  ;;  %v1036_v20 = vmul.f32 -1.442695, %v863_v17 }
0x10f5   :  { %1201 = vpow2.f32 %v1036_v20 }
0x1100   :  { %v1200_v19 = vpop.eup %1199 }
0x1101   :  { %874 = vrot.lane.b32.xlu0 %v1200_v19, %s1239_s13 }
0x1102   :  { %v1202_v22 = vpop.eup %1201 }
0x1103   :  { %v867_v23 = vadd.f32 1.0, %v1202_v22 }
0x1105   :  { %1203 = vrcp.f32 %v867_v23 }
0x1112   :  { %v1204_v24 = vpop.eup %1203 }
0x1113   :  { %v872_v28 = vmul.f32 %v1204_v24, %v871_v27 }
0x1173   :  { %v875_v25 = vpop.permute.xlu0 %874 }
0x1174   :  { %v877_v26 = vmul.f32 %v1204_v24, %v875_v25 }
0x1176   :  { %879 = vrot.lane.b32.xlu1 %v877_v26, %s1240_s3 }
0x11e8   :  { %v880_v29 = vpop.permute.xlu1 %879 }
0x11e9   :  { %v882_v30 = vadd.f32 %v880_v29, %v872_v28 }
0x11eb   :  { %1205 = vtanh.f32 %v882_v30  ;;  %v972_v47 = vmul.f32 %v1337_v21, %v882_v30  ;;  %v990_v21 = vld [vmem:[%s1463_s5] sm:$0xff] }
0x11f8   :  { %v1206_v31 = vpop.eup %1205 }
0x11f9   :  { %885 = vrot.lane.b32.xlu0 %v1206_v31, %s1241_s16 }
0x126b   :  { %v886_v32 = vpop.permute.xlu0 %885 }
0x126c   :  { %v888_v33 = vmul.f32 %v1204_v24, %v886_v32 }
0x126e   :  { %890 = vrot.lane.b32.xlu1 %v888_v33, %s1239_s13 }
0x12e0   :  { %v891_v34 = vpop.permute.xlu1 %890 }
0x12e1   :  { %1143 = vmatmul.mubr.msk.f32.vlgmr.msra.gmra.mxu1 %vm45_vm0, %v891_v34 }
0x13a1   :  { %v960_v36 = vpop.f32.mrf.mxu1 }
0x13a2   :  { %v964_v37 = vadd.f32 %v960_v36, %v172_v35 }
0x13a3   :  { %v1144_v39 = vpop.f32.mrf.mxu1 }
0x13a4   :  { %1207 = vtanh.f32 %v964_v37  ;;  %v1038_v41 = vmul.f32 -1.442695, %v964_v37 }
0x13a6   :  { %1209 = vpow2.f32 %v1038_v41 }
0x13b1   :  { %v1208_v40 = vpop.eup %1207 }
0x13b2   :  { %975 = vrot.lane.b32.xlu0 %v1208_v40, %s1239_s13 }
0x13b3   :  { %v1210_v42 = vpop.eup %1209 }
0x13b4   :  { %v968_v43 = vadd.f32 1.0, %v1210_v42 }
0x13b6   :  { %1211 = vrcp.f32 %v968_v43 }
0x13c3   :  { %v1212_v44 = vpop.eup %1211 }
0x13c4   :  { %v973_v8 = vmul.f32 %v1212_v44, %v972_v47 }
0x1424   :  { %v976_v45 = vpop.permute.xlu0 %975 }
0x1425   :  { %v978_v46 = vmul.f32 %v1212_v44, %v976_v45 }
0x1427   :  { %980 = vrot.lane.b32.xlu1 %v978_v46, %s1240_s3 }
0x1499   :  { %v981_v38 = vpop.permute.xlu1 %980 }
0x149a   :  { %v983_v48 = vadd.f32 %v981_v38, %v973_v8 }
0x149c   :  { %1213 = vtanh.f32 %v983_v48 }
0x14a9   :  { %v1214_v49 = vpop.eup %1213 }
0x14aa   :  { %986 = vrot.lane.b32.xlu0 %v1214_v49, %s1241_s16 }
0x151c   :  { %v987_v51 = vpop.permute.xlu0 %986 }
0x151d   :  { %v989_v52 = vmul.f32 %v1212_v44, %v987_v51 }
0x151f   :  { %v993_v53 = vmul.f32 %v992_v50, %v989_v52 }
0x1521   :  { %995 = vrot.lane.b32.xlu1 %v993_v53, %s1239_s13 }
0x1593   :  { %v996_v54 = vpop.permute.xlu1 %995 }
0x1594   :  { %v998_v55 = vadd.f32 %v996_v54, %v990_v21 }
0x1596   :  { %999 = vst.msk [vmem:[#allocation3] sm:$0xff] %vm45_vm0, %v998_v55 }
0x1597   :  { %1226 = shalt.err (!%p1223_p4)
}
0x1598   :  { %1009 = dma.vmem_to_hbm [thread:$0]  %s1007_s9, 128, %s1465_s7, [#allocation4]  }
0x1599   :  { %1235 = dma.done.wait [#allocation4], 128  }
0x159a   :  { %1236 = vsyncadd [#allocation4], 4294967168 }
0x159b   :  { %1013 = vsyncpa [#allocation4], 1 }

</bundles_post_ra>
